<compile_context>
chip_gen: v7x
topology: tpu7x:2x2x1
jax: 0.10.0
libtpu: 0.0.40
codegen_flags: <defaults>
</compile_context>

<pallas_src>
import math

import jax
import jax.numpy as jnp
from jax import lax
from jax.experimental import pallas as pl
from jax.experimental.pallas import tpu as pltpu


def _build_pe(max_seq_length: int, d_model: int) -> jnp.ndarray:
    """Exact replica of the PyTorch __init__ loop (asymmetric exponent kept)."""
    assert d_model % 2 == 0, "d_model must be even (matches PyTorch module)"
    pe = [[0.0] * d_model for _ in range(max_seq_length)]
    for pos in range(max_seq_length):
        for i in range(0, d_model, 2):
            pe[pos][i] = math.sin(pos / 10000 ** (2 * i / d_model))
            pe[pos][i + 1] = math.cos(pos / 10000 ** (2 * (i + 1) / d_model))
    return jnp.asarray(pe, dtype=jnp.float32)  # (max_seq_length, d_model)


def _round_up(a: int, b: int) -> int:
    return -(-a // b) * b


def _vmem_budget():
    """(vmem_limit_bytes, target_tile_bytes), derived from the chip's VMEM."""
    try:
        cap = int(pltpu.get_tpu_info().vmem_capacity_bytes)
    except Exception:  # pragma: no cover - conservative fallback (v7x per-TC)
        cap = 64 * 1024 * 1024
    vmem_limit = min(cap * 3 // 4, 64 * 1024 * 1024)   # 48 MiB v7x, 64 MiB v5e/v6e
    # Double-buffered x + y tiles (4x) plus f32 intermediates / PE headroom.
    target_tile_bytes = max(1 << 20, min(8 << 20, vmem_limit // 8))
    return vmem_limit, target_tile_bytes


def _choose_tiles(R: int, C: int, itemsize: int, target_tile_bytes: int):
    """Pick (tile_r, tile_c, R_pad) for the flattened (R, C) = (B, S*D) view."""
    min_r = {4: 8, 2: 16, 1: 32}.get(itemsize, 8)      # dtype-aware sublane tile
    target_elems = max(min_r * 128, target_tile_bytes // itemsize)

    # --- column tile: multiple of 128 dividing C (lane-dense), else full C ---
    if C % 128 != 0:
        tile_c = C
    else:
        cap = max(128, (target_elems // min_r) // 128 * 128)
        if C <= cap:
            tile_c = C
        else:
            tile_c = 128
            d = cap
            while d >= 128:
                if C % d == 0:
                    tile_c = d
                    break
                d -= 128

    # --- row tile: multiple of min_r within budget; pad rows instead of
    #     ever requesting an oversized (tile_r = R) block ---
    rows_budget = max(min_r, (target_elems // tile_c) // min_r * min_r)
    r_ceil = _round_up(R, min_r)
    if r_ceil <= rows_budget:
        tile_r = r_ceil
    else:
        tile_r = None
        if R % min_r == 0:
            d = rows_budget
            while d >= min_r:
                if R % d == 0:          # divisor -> no padding needed
                    tile_r = d
                    break
                d -= min_r
        if tile_r is None:
            tile_r = rows_budget
    r_pad = _round_up(R, tile_r)
    return tile_r, tile_c, r_pad


def _make_kernel(scale: float, tile_r: int, num_rows: int, needs_mask: bool):
    def kernel(x_ref, pe_ref, y_ref, part_ref):
        # x_ref / y_ref: (tile_r, tile_c) tile of the flattened (B, S*D) view.
        # pe_ref:        (1, tile_c) f32 slice of the flattened PE row
        #                (sublane broadcast on-chip -> no HBM blow-up).
        # part_ref:      (1, 2) SMEM block holding this tile's (sum, sum_sq).
        x = x_ref[...].astype(jnp.float32)
        pe = pe_ref[...]
        out = x * scale + pe                           # fused mul-add, f32
        y_ref[...] = out.astype(y_ref.dtype)

        if needs_mask:
            # Only the padded trailing rows of the last row block are invalid.
            row0 = pl.program_id(1) * tile_r
            row_ids = row0 + lax.broadcasted_iota(jnp.int32, out.shape, 0)
            acc = jnp.where(row_ids < num_rows, out, 0.0)
        else:
            acc = out

        # Lane-axis reductions first; second stage works on (tile_r, 1) only.
        # (Free filler under the HBM bound on v6e/v7x; keeps v5e off the VALU.)
        row_s = jnp.sum(acc, axis=-1, keepdims=True)
        row_ss = jnp.sum(acc * acc, axis=-1, keepdims=True)
        part_ref[0, 0] = jnp.sum(row_s)
        part_ref[0, 1] = jnp.sum(row_ss)

    return kernel


def positional_encoder_forward(x: jnp.ndarray, pe_full: jnp.ndarray, d_model: int):
    """x: (B, S, D); pe_full: (max_seq_length, D) f32.  Returns (y, std).

    Matches PyTorch forward: y = x * sqrt(d_model) + pe[:, :S]; std = y.std()
    (unbiased, over all elements).
    """
    B, S, D = x.shape
    assert D == d_model

    R, C = B, S * D
    vmem_limit, target_tile_bytes = _vmem_budget()
    tile_r, tile_c, r_pad = _choose_tiles(R, C, jnp.dtype(x.dtype).itemsize,
                                          target_tile_bytes)
    n_r, n_c = r_pad // tile_r, C // tile_c
    num_tiles = n_r * n_c
    needs_mask = r_pad != R

    x2 = x.reshape(R, C)
    if needs_mask:
        x2 = jnp.pad(x2, ((0, r_pad - R), (0, 0)))
    # PE stays f32 (like the PyTorch buffer); add is done in f32 in-kernel.
    # TODO(synk): for bf16 x, PyTorch's dtype promotion would return f32;
    # here the output is cast back to x.dtype.
    pe2 = pe_full[:S, :].astype(jnp.float32).reshape(1, C)

    kernel = _make_kernel(float(math.sqrt(d_model)), tile_r, R, needs_mask)

    y2, partials = pl.pallas_call(
        kernel,
        out_shape=(
            jax.ShapeDtypeStruct((r_pad, C), x.dtype),
            jax.ShapeDtypeStruct((num_tiles, 2), jnp.float32),
        ),
        grid_spec=pltpu.PrefetchScalarGridSpec(
            num_scalar_prefetch=0,
            # Columns OUTER, rows INNER: PE block index (0, c) is constant
            # across consecutive steps -> no redundant PE re-DMA.
            grid=(n_c, n_r),
            in_specs=[
                pl.BlockSpec((tile_r, tile_c), lambda c, r: (r, c)),
                pl.BlockSpec((1, tile_c), lambda c, r: (0, c)),
            ],
            out_specs=[
                pl.BlockSpec((tile_r, tile_c), lambda c, r: (r, c)),
                pl.BlockSpec(
                    (1, 2),
                    lambda c, r: (c * n_r + r, 0),
                    memory_space=pltpu.MemorySpace.SMEM,
                ),
            ],
        ),
        compiler_params=pltpu.CompilerParams(
            dimension_semantics=("parallel", "parallel"),
            vmem_limit_bytes=vmem_limit,
        ),
    )(x2, pe2)

    # ---- finalize: pooled (Chan-style) combination of per-tile partials ----
    # Per-tile element counts (pad rows already masked to 0 inside the kernel).
    r_idx = jnp.arange(n_r)
    valid_rows = jnp.clip(R - r_idx * tile_r, 0, tile_r).astype(jnp.float32)
    counts = jnp.tile(valid_rows * float(tile_c), n_c)        # order: c outer, r inner

    s_t = partials[:, 0]
    ss_t = partials[:, 1]
    mean_t = s_t / counts
    m2_t = jnp.maximum(ss_t - s_t * mean_t, 0.0)               # per-tile SS around tile mean
    n_total = float(R * C)
    grand_mean = jnp.sum(s_t) / n_total
    m2 = jnp.sum(m2_t) + jnp.sum(counts * jnp.square(mean_t - grand_mean))
    var = m2 / (n_total - 1.0)                                 # unbiased, like torch .std()
    std = jnp.sqrt(jnp.maximum(var, 0.0))

    y = y2[:R].reshape(B, S, D)
    return y, std


if __name__ == "__main__":
    # Small, deterministic example consistent with the module.
    max_seq_length = 16
    d_model = 32
    B, S = 2, 8

    pe_full = _build_pe(max_seq_length, d_model)

    key = jax.random.PRNGKey(0)
    x = jax.random.normal(key, (B, S, d_model), dtype=jnp.float32)

    y, std = positional_encoder_forward(x, pe_full, d_model)
    jax.block_until_ready(y)
    jax.block_until_ready(std)

    # Reference check in plain JAX (same math as the PyTorch forward).
    y_ref = x * math.sqrt(d_model) + pe_full[None, :S, :]
    std_ref = jnp.std(y_ref, ddof=1)
    assert jnp.allclose(y, y_ref, atol=1e-5, rtol=1e-5)
    assert jnp.allclose(std, std_ref, atol=1e-4, rtol=1e-4)

    print("KERNEL_OK")
</pallas_src>

<mosaic_0001>
module attributes {stable_mosaic.version = 11 : i64} {
  func.func @kernel(%arg0: i32, %arg1: i32, %arg2: memref<8x256xf32, #tpu.memory_space<vmem>>, %arg3: memref<1x256xf32, #tpu.memory_space<vmem>>, %arg4: memref<8x256xf32, #tpu.memory_space<vmem>>, %arg5: memref<1x2xf32, #tpu.memory_space<smem>>) attributes {dimension_semantics = [#tpu.dimension_semantics<parallel>, #tpu.dimension_semantics<parallel>], iteration_bounds = array<i64: 1, 1>, scalar_prefetch = 0 : i64, scratch_operands = 0 : i64, tpu.core_type = #tpu.core_type<tc>, window_params = [{transform_indices = @transform_0, window_bounds = array<i64: 8, 256>}, {transform_indices = @transform_1, window_bounds = array<i64: 1, 256>}, {transform_indices = @transform_2, window_bounds = array<i64: 8, 256>}, {transform_indices = @transform_3, window_bounds = array<i64: 1, 2>}]} {
    %c0 = arith.constant 0 : index
    %c0_0 = arith.constant 0 : index
    %0 = vector.load %arg2[%c0, %c0_0] : memref<8x256xf32, #tpu.memory_space<vmem>>, vector<8x256xf32>
    %c0_1 = arith.constant 0 : index
    %c0_2 = arith.constant 0 : index
    %1 = vector.load %arg3[%c0_1, %c0_2] : memref<1x256xf32, #tpu.memory_space<vmem>>, vector<1x256xf32>
    %cst = arith.constant 5.65685415 : f32
    %2 = vector.broadcast %cst : f32 to vector<8x256xf32>
    %3 = arith.mulf %0, %2 : vector<8x256xf32>
    %4 = vector.broadcast %1 : vector<1x256xf32> to vector<8x256xf32>
    %5 = arith.addf %3, %4 : vector<8x256xf32>
    %c0_3 = arith.constant 0 : index
    %c0_4 = arith.constant 0 : index
    %6 = vector.load %arg4[%c0_3, %c0_4] : memref<8x256xf32, #tpu.memory_space<vmem>>, vector<8x256xf32>
    tpu.vector_store %arg4[%c0_3, %c0_4], %5 {strides = array<i32>} : memref<8x256xf32, #tpu.memory_space<vmem>>, vector<8x256xf32>,
    %c8_i32 = arith.constant 8 : i32
    %7 = arith.muli %arg1, %c8_i32 : i32
    %8 = tpu.iota {dimensions = array<i32: 0>} : vector<8x256xi32>
    %9 = vector.broadcast %7 : i32 to vector<8x256xi32>
    %10 = arith.addi %9, %8 : vector<8x256xi32>
    %c2_i32 = arith.constant 2 : i32
    %11 = vector.broadcast %c2_i32 : i32 to vector<8x256xi32>
    %12 = arith.cmpi slt, %10, %11 : vector<8x256xi32>
    %cst_5 = arith.constant 0.000000e+00 : f32
    %13 = vector.broadcast %cst_5 : f32 to vector<8x256xf32>
    %14 = arith.select %12, %5, %13 : vector<8x256xi1>, vector<8x256xf32>
    %cst_6 = arith.constant dense<0.000000e+00> : vector<8xf32>
    %15 = vector.multi_reduction <add>, %14, %cst_6 [1] : vector<8x256xf32> to vector<8xf32>
    %16 = vector.shape_cast %15 : vector<8xf32> to vector<8x1xf32>
    %17 = arith.mulf %14, %14 : vector<8x256xf32>
    %cst_7 = arith.constant dense<0.000000e+00> : vector<8xf32>
    %18 = vector.multi_reduction <add>, %17, %cst_7 [1] : vector<8x256xf32> to vector<8xf32>
    %19 = vector.shape_cast %18 : vector<8xf32> to vector<8x1xf32>
    %20 = vector.shape_cast %16 : vector<8x1xf32> to vector<1x8x1xf32>
    %cst_8 = arith.constant dense<0.000000e+00> : vector<1xf32>
    %21 = vector.multi_reduction <add>, %20, %cst_8 [1, 2] : vector<1x8x1xf32> to vector<1xf32>
    %22 = vector.shape_cast %21 : vector<1xf32> to vector<1x1x1xf32>
    %23 = vector.extract %22[0, 0, 0] : f32 from vector<1x1x1xf32>
    %c0_9 = arith.constant 0 : index
    %c0_10 = arith.constant 0 : index
    %24 = memref.load %arg5[%c0_9, %c0_10] : memref<1x2xf32, #tpu.memory_space<smem>>
    memref.store %23, %arg5[%c0_9, %c0_10] : memref<1x2xf32, #tpu.memory_space<smem>>
    %25 = vector.shape_cast %19 : vector<8x1xf32> to vector<1x8x1xf32>
    %cst_11 = arith.constant dense<0.000000e+00> : vector<1xf32>
    %26 = vector.multi_reduction <add>, %25, %cst_11 [1, 2] : vector<1x8x1xf32> to vector<1xf32>
    %27 = vector.shape_cast %26 : vector<1xf32> to vector<1x1x1xf32>
    %28 = vector.extract %27[0, 0, 0] : f32 from vector<1x1x1xf32>
    %c0_12 = arith.constant 0 : index
    %c1 = arith.constant 1 : index
    %29 = memref.load %arg5[%c0_12, %c1] : memref<1x2xf32, #tpu.memory_space<smem>>
    memref.store %28, %arg5[%c0_12, %c1] : memref<1x2xf32, #tpu.memory_space<smem>>
    return
  }
  func.func @transform_0(%arg0: i32, %arg1: i32) -> (i32, i32) {
    %c0_i32 = arith.constant 0 : i32
    return %arg1, %arg0 : i32, i32
  }
  func.func @transform_1(%arg0: i32, %arg1: i32) -> (i32, i32) {
    %c0_i32 = arith.constant 0 : i32
    %c0_i32_0 = arith.constant 0 : i32
    return %c0_i32, %arg0 : i32, i32
  }
  func.func @transform_2(%arg0: i32, %arg1: i32) -> (i32, i32) {
    %c0_i32 = arith.constant 0 : i32
    return %arg1, %arg0 : i32, i32
  }
  func.func @transform_3(%arg0: i32, %arg1: i32) -> (i32, i32) {
    %c1_i32 = arith.constant 1 : i32
    %0 = arith.muli %arg0, %c1_i32 : i32
    %1 = arith.addi %0, %arg1 : i32
    %c0_i32 = arith.constant 0 : i32
    %c0_i32_0 = arith.constant 0 : i32
    return %1, %c0_i32 : i32, i32
  }
}

</mosaic_0001>

<bundles_post_ra>
// kernel: tpu_custom_call.1
= control target key start
LH: loop header
LB: loop body
LE: loop exit
PB: predicated region body
PF: predicated region fallthrough
CT: control target
= control target key end

     0   :  { %9 = vsyncpa [#allocation3], 0  ;;  %s249_s0 = inlined_call_operand.hbm [shape: f32[8,256], index: 0, kind: input, shape index: {}]   ;;  %s250_s1 = inlined_call_operand.vmem [shape: f32[1,256], index: 1, kind: input, shape index: {}]   ;;  %s251_s2 = inlined_call_operand.hbm [shape: f32[8,256], index: 2, kind: output, shape index: {0}]   ;;  %s252_s3 = inlined_call_operand.hbm [shape: f32[1,2], index: 3, kind: output, shape index: {1}]  }
   0x1   :  { %10 = vsyncpa [#allocation4], 0 }
   0x2   :  { %11 = vsyncpa [#allocation5], 0  ;;  %s187_s12 = smov [#allocation2]   ;;  %s127_s16 = scalar_lea.hbm %s249_s0, 256 }
   0x3   :  { %s18_s13 = sshll.u32 %s187_s12, 4  ;;  %p128_p0 = scmp.ne.s32.totalorder %s249_s0, %s127_s16  ;;  %s19_s13 = int_to_ptr.vmem [resolvable:$true] %s18_s13 }
   0x4   :  { %p131_p1 = scmp.lt.u32.totalorder %s127_s16, %s249_s0 }
   0x6   :  { %p133_p2 = pnand %p131_p1, %p128_p0 }
   0x8   :  { %136 = shalt.err (!%p133_p2)
}
   0x9   :  { %s137_s21 = scalar_lea.vmem %s19_s13, 256  ;;  %p142_p4 = scmp.lt.s32.totalorder %s19_s13, %s19_s13 }
   0xa   :  { %p138_p3 = scmp.ne.s32.totalorder %s19_s13, %s137_s21  ;;  %p143_p5 = scmp.lt.s32.totalorder %s137_s21, %s137_s21 }
   0xc   :  { %p144_p6 = por %p143_p5, %p142_p4 }
   0xe   :  { %p145_p7 = pnand %p144_p6, %p138_p3 }
  0x10   :  { %148 = shalt.err (!%p145_p7)
}
  0x11   :  { %21 = dma.hbm_to_vmem [thread:$0]  %s249_s0, 256, %s19_s13, [#allocation3]  }
  0x12   :  { %181 = dma.done.wait [#allocation3], 256  }
  0x13   :  { %182 = vsyncadd [#allocation3], 4294967040  ;;  %v34_v0 = vlaneseq  ;;  %v28_v4 = vld [vmem:[#allocation2] sm:$0xff]  ;;  %v29_v5 = vld [vmem:[#allocation2 + $0x8] sm:$0xff]  ;;  %vm64_vm1 = vcmask 7168   ;;  %s188_s0 = smov [#allocation6]  }
  0x14   :  { %v30_v6 = vld [vmem:[%s250_s1] sm:$0x3]  ;;  %v31_v7 = vmul.f32 5.656854, %v28_v4  ;;  %v32_v8 = vmul.f32 5.656854, %v29_v5 }
  0x15   :  { %v35_v1 = vshrl.u32 %v34_v0, 7  ;;  %s95_s1 = sshll.u32 %s188_s0, 4  ;;  %s96_s1 = int_to_ptr.vmem [resolvable:$true] %s95_s1 }
  0x16   :  { %s149_s26 = scalar_lea.vmem %s96_s1, 256  ;;  %p154_p9 = scmp.lt.s32.totalorder %s96_s1, %s96_s1 }
  0x17   :  { %v36_v2 = vsub.s32 0, %v35_v1  ;;  %v40_v3 = vsub.s32 1, %v35_v1  ;;  %vm53_vm0 = vcmp.lt.s32.totalorder %v35_v1, 2  ;;  %p150_p8 = scmp.ne.s32.totalorder %s96_s1, %s149_s26  ;;  %p155_p10 = scmp.lt.s32.totalorder %s149_s26, %s149_s26 }
  0x19   :  { %v37_v9 = vrot.slane %v30_v6, %v36_v2  ;;  %v41_v10 = vrot.slane %v30_v6, %v40_v3  ;;  %p156_p11 = por %p155_p10, %p154_p9 }
  0x1b   :  { %v44_v11 = vadd.f32 %v37_v9, %v31_v7  ;;  %v45_v12 = vadd.f32 %v41_v10, %v32_v8  ;;  %p157_p12 = pnand %p156_p11, %p150_p8 }
  0x1d   :  { %v54_v13 = vsel %vm53_vm0, %v44_v11, 0.0  ;;  %v55_v14 = vsel %vm53_vm0, %v45_v12, 0.0  ;;  %46 = vst [vmem:[#allocation6] sm:$0xff] %v44_v11  ;;  %47 = vst [vmem:[#allocation6 + $0x8] sm:$0xff] %v45_v12 }
  0x1e   :  { %v56_v15 = vadd.f32 %v55_v14, %v54_v13  ;;  %v59_v16 = vmul.f32 %v54_v13, %v54_v13  ;;  %v60_v17 = vmul.f32 %v55_v14, %v55_v14 }
  0x20   :  { %57 = vadd.xlane.f32.xlu0 %v56_v15  ;;  %v61_v18 = vadd.f32 %v60_v17, %v59_v16 }
  0x24   :  { %62 = vadd.xlane.f32.xlu0 %v61_v18 }
  0xad   :  { %v58_v19 = vpop.xlane.xlu0 %57 }
  0xae   :  { %v65_v20 = vsel %vm64_vm1, %v58_v19, 0.0 }
  0xaf   :  { %66 = vadd.xlane.f32.xlu1 %v65_v20 }
  0xb1   :  { %v63_v21 = vpop.xlane.xlu0 %62 }
  0xb2   :  { %v77_v22 = vsel %vm64_vm1, %v63_v21, 0.0 }
  0xb3   :  { %78 = vadd.xlane.f32.xlu1 %v77_v22 }
  0xb4   :  { %160 = shalt.err (!%p157_p12)
}
  0xb5   :  { %s161_s29 = scalar_lea.hbm %s251_s2, 256 }
  0xb6   :  { %p162_p13 = scmp.ne.s32.totalorder %s251_s2, %s161_s29  ;;  %p165_p0 = scmp.lt.u32.totalorder %s161_s29, %s251_s2 }
  0xb8   :  { %p167_p1 = pnand %p165_p0, %p162_p13 }
  0xba   :  { %170 = shalt.err (!%p167_p1)
}
  0xbb   :  { %98 = dma.vmem_to_hbm [thread:$0]  %s96_s1, 256, %s251_s2, [#allocation4]  }
  0xbc   :  { %s171_s12 = scalar_lea.hbm %s252_s3, 16 }
  0xbd   :  { %p172_p2 = scmp.ne.s32.totalorder %s252_s3, %s171_s12  ;;  %p175_p3 = scmp.lt.u32.totalorder %s171_s12, %s252_s3 }
  0xbf   :  { %p177_p4 = pnand %p175_p3, %p172_p2 }
 0x13c   :  { %v67_v23 = vpop.xlane.xlu1 %66 }
 0x13d   :  { %v68_v24 = vrot.slane %v67_v23, 4 }
 0x13f   :  { %v69_v25 = vadd.f32 %v68_v24, %v67_v23 }
 0x140   :  { %v79_v26 = vpop.xlane.xlu1 %78 }
 0x141   :  { %v70_v27 = vrot.slane %v69_v25, 2  ;;  %v80_v28 = vrot.slane %v79_v26, 4 }
 0x143   :  { %v81_v29 = vadd.f32 %v80_v28, %v79_v26  ;;  %v71_v30 = vadd.f32 %v70_v27, %v69_v25 }
 0x145   :  { %v82_v31 = vrot.slane %v81_v29, 2  ;;  %v72_v32 = vrot.slane %v71_v30, 1 }
 0x147   :  { %v83_v33 = vadd.f32 %v82_v31, %v81_v29  ;;  %v73_v34 = vadd.f32 %v72_v32, %v71_v30 }
 0x149   :  { %120 = vpush %v73_v34  ;;  %v84_v35 = vrot.slane %v83_v33, 1 }
 0x14b   :  { %v85_v36 = vadd.f32 %v84_v35, %v83_v33 }
 0x14d   :  { %122 = vpush %v85_v36 }
 0x17a   :  { %s121_s9 = spop %120 }
 0x17b   :  { %76 = sst [smem:[#allocation7]] %s121_s9 }
 0x17e   :  { %s123_s10 = spop %122 }
 0x17f   :  { %88 = sst [smem:[#allocation7 + $0x1]] %s123_s10 }
 0x180   :  { %180 = shalt.err (!%p177_p4)
}
 0x181   :  { %s189_s17 = smov [#allocation7]  }
 0x182   :  { %109 = dma.smem_to_hbm %s189_s17, 16, %s252_s3, [#allocation5]  }
 0x183   :  { %183 = dma.done.wait [#allocation4], 256  }
 0x184   :  { %184 = vsyncadd [#allocation4], 4294967040 }
 0x185   :  { %185 = dma.done.wait [#allocation5], 16  }
 0x186   :  { %186 = vsyncadd [#allocation5], 4294967280 }
 0x187   :  { %116 = sfence }
 0x188   :  { %117 = vsyncpa [#allocation3], 1 }
 0x189   :  { %118 = vsyncpa [#allocation4], 1 }
 0x18a   :  { %119 = vsyncpa [#allocation5], 1 }

</bundles_post_ra>
